<compile_context>
chip_gen: v6e
topology: v6e:2x2x1
jax: 0.10.0
libtpu: 0.0.40
codegen_flags: <defaults>
</compile_context>

<pallas_src>
import functools
import math

import jax
import jax.numpy as jnp
from jax.experimental import pallas as pl
from jax.experimental.pallas import tpu as pltpu


def _posenc_add_kernel(x_ref, pe_ref, o_ref):
    # Elementwise hot path: add the positional-encoding tile onto the input tile.
    o_ref[...] = x_ref[...] + pe_ref[...]


def make_sinusoidal_pe(d_model: int, max_length: int = 1024, dtype=jnp.float32):
    """Build the (1, max_length, d_model) sinusoidal table (matches the torch init,
    including odd d_model: even columns = sin, odd columns = cos (truncated))."""
    position = jnp.arange(max_length, dtype=jnp.float32)[:, None]              # (L, 1)
    div_term = jnp.exp(
        jnp.arange(0, d_model, 2, dtype=jnp.float32)
        * -(math.log(10000.0) / d_model)
    )                                                                           # (ceil(D/2),)
    angles = position * div_term                                                # (L, ceil(D/2))
    pe = jnp.zeros((max_length, d_model), dtype=jnp.float32)
    pe = pe.at[:, 0::2].set(jnp.sin(angles))
    pe = pe.at[:, 1::2].set(jnp.cos(angles[:, : d_model // 2]))
    return pe[None, :, :].astype(dtype)                                         # (1, L, D)


def _default_block_bytes():
    """Per-generation block-size target: v5e keeps ~2 MiB blocks (16 MiB scoped VMEM
    default); v6e/v7x use ~4 MiB blocks (fits their 32 MiB scoped default)."""
    kind = ""
    try:
        kind = jax.devices()[0].device_kind.lower()
    except Exception:
        pass
    if any(tag in kind for tag in ("v6", "v7", "7x")):
        return 4 * 1024 * 1024
    return 2 * 1024 * 1024                     # conservative default (v5e & unknown)


def _choose_tile_rows(total_rows, row_bytes, sublane, target_bytes):
    """Largest sublane-multiple row count giving ~target_bytes per block (byte-based
    cap; no fixed row cap).  If the whole axis fits in one block, use the full axis —
    a full-extent block is always layout-legal."""
    t = (target_bytes // max(1, row_bytes)) // sublane * sublane
    t = max(t, sublane)
    if t >= total_rows:
        return total_rows
    return t


def _pallas_add(x3, pe3, tile_rows, interpret):
    """x3: (B, R, C); pe3: (1, Rpe, C) with Rpe >= R. Returns x3 + pe3[:, :R]."""
    B, R, C = x3.shape
    num_tiles = pl.cdiv(R, tile_rows)          # ragged final block is masked by Pallas
    itemsize = jnp.dtype(x3.dtype).itemsize
    cost = pl.CostEstimate(flops=B * R * C, transcendentals=0,
                           bytes_accessed=(2 * B * R * C + R * C) * itemsize)

    # Seq-tile outermost (pe DMA reused across inner batch steps).  If there is only
    # one seq tile, flip so the batch axis is outermost and both v7x TCs get work.
    batch_outer = (num_tiles == 1 and B > 1)
    if batch_outer:
        grid = (B, num_tiles)
        x_map = lambda b, s: (b, s, 0)
        pe_map = lambda b, s: (0, s, 0)
    else:
        grid = (num_tiles, B)
        x_map = lambda s, b: (b, s, 0)
        pe_map = lambda s, b: (0, s, 0)

    return pl.pallas_call(
        _posenc_add_kernel,
        out_shape=jax.ShapeDtypeStruct((B, R, C), x3.dtype),
        grid_spec=pltpu.PrefetchScalarGridSpec(
            num_scalar_prefetch=0,
            grid=grid,
            in_specs=[
                pl.BlockSpec((1, tile_rows, C), x_map),    # x tile
                pl.BlockSpec((1, tile_rows, C), pe_map),   # shared pe tile
            ],
            out_specs=pl.BlockSpec((1, tile_rows, C), x_map),
        ),
        compiler_params=pltpu.CompilerParams(
            # Both axes independent -> mem-bound grid can shard across v7x's 2 TCs.
            dimension_semantics=("parallel", "parallel"),
        ),
        input_output_aliases={0: 0},           # output aliases x (safe per-block add)
        cost_estimate=cost,
        interpret=interpret,
    )(x3, pe3)


@functools.partial(jax.jit, static_argnames=("interpret", "block_bytes"))
def positional_encoding_forward(x, pe, *, interpret: bool = False, block_bytes=None):
    """out = x + pe[:, :seq_len], seq_len = x.shape[-2] if x.ndim > 2 else 1."""
    if pe.dtype != x.dtype:
        # Fallback cast (prefer building the table in the activation dtype).
        pe = pe.astype(x.dtype)

    if x.ndim <= 2:
        # torch semantics: seq_len = 1, and broadcasting against (1, 1, D) yields a
        # rank-3 result (exactly what the PyTorch module returns for <=2-D inputs).
        return x + pe[:, :1]

    *lead, S, D = x.shape
    L = pe.shape[1]
    if S > L:
        raise ValueError(f"seq_len {S} exceeds positional-encoding max_length {L}")

    B = math.prod(lead)
    x3 = x.reshape(B, S, D)
    itemsize = jnp.dtype(x.dtype).itemsize
    sublane = max(8, 32 // itemsize)          # f32: 8, bf16: 16, int8/fp8: 32
    target = block_bytes if block_bytes is not None else _default_block_bytes()

    if D % 128 != 0 and (S * D) % 128 == 0:
        # Lane-dense path: present rows of 128 lanes so stores are unmasked vst.
        R = (S * D) // 128
        xr = x3.reshape(B, R, 128)
        tile_rows = _choose_tile_rows(R, 128 * itemsize, sublane, target)
        if tile_rows % sublane == 0 and (L * D) % 128 == 0:
            # No wrapper-side slice copy: reshape the full table; the BlockSpec
            # index_map only ever touches its first R rows.
            per = pe.reshape(1, (L * D) // 128, 128)
        else:
            # Single non-sublane-multiple block (or non-reshapeable table): make the
            # pe block equal its full dims so the (8,128) block rule is satisfied.
            per = pe[:, :S, :].reshape(1, R, 128)
        out = _pallas_add(xr, per, tile_rows, interpret)
        return out.reshape(x.shape)

    # Main path: tile the sequence axis, keep D whole on the lane axis.
    tile_rows = _choose_tile_rows(S, D * itemsize, sublane, target)
    if tile_rows % sublane == 0:
        pe_in = pe                       # full table; BlockSpec does the row slicing
    else:
        # tile_rows == S with S not a sublane multiple: full-extent pe block.
        pe_in = pe[:, :S, :]
    out = _pallas_add(x3, pe_in, tile_rows, interpret)
    return out.reshape(x.shape)


if __name__ == "__main__":
    key = jax.random.PRNGKey(0)
    max_length = 64

    # Case 1: small d_model (D % 128 != 0) -> lane-dense reshape path.
    B, S, D = 2, 8, 32
    x = jax.random.normal(key, (B, S, D), dtype=jnp.float32)
    pe = make_sinusoidal_pe(D, max_length, dtype=jnp.float32)
    out = jax.block_until_ready(positional_encoding_forward(x, pe))
    ref = x + pe[:, :S]
    assert out.shape == (B, S, D)
    assert jnp.allclose(out, ref, atol=1e-6), "mismatch (lane-dense path)"

    # Case 2: D a multiple of 128 -> main path, single seq tile, batch-outer grid.
    B2, S2, D2 = 2, 16, 128
    x2 = jax.random.normal(jax.random.PRNGKey(0), (B2, S2, D2), dtype=jnp.float32)
    pe2 = make_sinusoidal_pe(D2, max_length, dtype=jnp.float32)
    out2 = jax.block_until_ready(positional_encoding_forward(x2, pe2))
    ref2 = x2 + pe2[:, :S2]
    assert out2.shape == (B2, S2, D2)
    assert jnp.allclose(out2, ref2, atol=1e-6), "mismatch (main path)"

    # Case 3: ragged sequence tiling (forced tiny blocks -> cdiv grid, masked tail).
    B3, S3, D3 = 2, 20, 128
    x3 = jax.random.normal(jax.random.PRNGKey(1), (B3, S3, D3), dtype=jnp.float32)
    out3 = jax.block_until_ready(
        positional_encoding_forward(x3, pe2, block_bytes=8 * 128 * 4))
    ref3 = x3 + pe2[:, :S3]
    assert out3.shape == (B3, S3, D3)
    assert jnp.allclose(out3, ref3, atol=1e-6), "mismatch (ragged seq-tiled path)"

    # Case 4: odd d_model (torch-style sin/cos interleave with truncated cos half).
    B4, S4, D4 = 2, 8, 33
    x4 = jax.random.normal(jax.random.PRNGKey(2), (B4, S4, D4), dtype=jnp.float32)
    pe4 = make_sinusoidal_pe(D4, max_length, dtype=jnp.float32)
    out4 = jax.block_until_ready(positional_encoding_forward(x4, pe4))
    ref4 = x4 + pe4[:, :S4]
    assert out4.shape == (B4, S4, D4)
    assert jnp.allclose(out4, ref4, atol=1e-6), "mismatch (odd d_model path)"

    # Case 5: <=2-D fallback matches torch broadcasting (seq_len = 1, rank-3 result).
    x5 = jax.random.normal(jax.random.PRNGKey(3), (4, 32), dtype=jnp.float32)
    out5 = jax.block_until_ready(positional_encoding_forward(x5, pe))
    ref5 = x5 + pe[:, :1]
    assert out5.shape == (1, 4, 32)
    assert jnp.allclose(out5, ref5, atol=1e-6), "mismatch (2-D fallback)"

    print("KERNEL_OK")
</pallas_src>

<mosaic_0001>
module attributes {stable_mosaic.version = 11 : i64} {
  func.func @_posenc_add_kernel(%arg0: i32, %arg1: i32, %arg2: memref<1x2x128xf32, #tpu.memory_space<vmem>>, %arg3: memref<1x2x128xf32, #tpu.memory_space<vmem>>, %arg4: memref<1x2x128xf32, #tpu.memory_space<vmem>>) attributes {dimension_semantics = [#tpu.dimension_semantics<parallel>, #tpu.dimension_semantics<parallel>], iteration_bounds = array<i64: 2, 1>, scalar_prefetch = 0 : i64, scratch_operands = 0 : i64, tpu.core_type = #tpu.core_type<tc>, window_params = [{transform_indices = @transform_0, window_bounds = array<i64: 1, 2, 128>}, {transform_indices = @transform_1, window_bounds = array<i64: 1, 2, 128>}, {transform_indices = @transform_2, window_bounds = array<i64: 1, 2, 128>}]} {
    %c0 = arith.constant 0 : index
    %c0_0 = arith.constant 0 : index
    %c0_1 = arith.constant 0 : index
    %0 = vector.load %arg2[%c0, %c0_0, %c0_1] : memref<1x2x128xf32, #tpu.memory_space<vmem>>, vector<1x2x128xf32>
    %c0_2 = arith.constant 0 : index
    %c0_3 = arith.constant 0 : index
    %c0_4 = arith.constant 0 : index
    %1 = vector.load %arg3[%c0_2, %c0_3, %c0_4] : memref<1x2x128xf32, #tpu.memory_space<vmem>>, vector<1x2x128xf32>
    %2 = arith.addf %0, %1 : vector<1x2x128xf32>
    %c0_5 = arith.constant 0 : index
    %c0_6 = arith.constant 0 : index
    %c0_7 = arith.constant 0 : index
    %3 = vector.load %arg4[%c0_5, %c0_6, %c0_7] : memref<1x2x128xf32, #tpu.memory_space<vmem>>, vector<1x2x128xf32>
    tpu.vector_store %arg4[%c0_5, %c0_6, %c0_7], %2 {strides = array<i32>} : memref<1x2x128xf32, #tpu.memory_space<vmem>>, vector<1x2x128xf32>,
    return
  }
  func.func @transform_0(%arg0: i32, %arg1: i32) -> (i32, i32, i32) {
    %c0_i32 = arith.constant 0 : i32
    %c0_i32_0 = arith.constant 0 : i32
    return %arg0, %arg1, %c0_i32 : i32, i32, i32
  }
  func.func @transform_1(%arg0: i32, %arg1: i32) -> (i32, i32, i32) {
    %c0_i32 = arith.constant 0 : i32
    %c0_i32_0 = arith.constant 0 : i32
    %c0_i32_1 = arith.constant 0 : i32
    return %c0_i32, %arg1, %c0_i32_0 : i32, i32, i32
  }
  func.func @transform_2(%arg0: i32, %arg1: i32) -> (i32, i32, i32) {
    %c0_i32 = arith.constant 0 : i32
    %c0_i32_0 = arith.constant 0 : i32
    return %arg0, %arg1, %c0_i32 : i32, i32, i32
  }
}

</mosaic_0001>

<bundles_post_ra>
// kernel: positional_encoding_forward.1
= control target key start
LH: loop header
LB: loop body
LE: loop exit
PB: predicated region body
PF: predicated region fallthrough
CT: control target
= control target key end

     0   :  { %s354_s9 = smov 0   ;;  %s331_s10 = smov 0   ;;  %s368_s0 = inlined_call_operand.vmem [shape: f32[2,2,128], index: 0, kind: input, shape index: {}, may-alias: {0,2}]   ;;  %s369_s1 = inlined_call_operand.vmem [shape: f32[1,2,128], index: 1, kind: input, shape index: {}]   ;;  %s370_s2 = inlined_call_operand.vmem [shape: f32[2,2,128], index: 2, kind: output, shape index: {}, may-alias: {0,2}]  }
   0x1   :  { %s335_s11 = smov 0  }
   0x2 LB: > { %s24_s12 = sadd.s32 1, %s333_s10  ;;  %p286_p0 = scmp.ge.s32.totalorder %s337_s11, 1  ;;  %s337_s11 = sphi %s335_s11, %s12_s11   ;;  %s333_s10 = sphi %s331_s10, %s332_s10   ;;  %s329_s9 = sphi %s354_s9, %s371_s9  }
   0x3   : > { %p26_p1 = scmp.ge.s32.totalorder %s24_s12, 2  ;;  %p139_p2 = scmp.lt.s32.totalorder %s337_s11, 3 }
   0x5   : > { %s373_s12 = smov (%p26_p1, %s24_s12), 0  ;;  %p140_p3 = pnand %p286_p0, %p139_p2 }
   0x6   : > { %p169_p4 = scmp.lt.s32.totalorder (!%p140_p3), %s329_s9, 1 }
   0x7   : > { %143 = sbr.rel (%p140_p3) target bundleno = 19 (0x13), region = 28 }
   0xc   : > { %s375_s9 = smov (!%p169_p4, %s329_s9), 1  ;;  %v188_v0 = vld [vmem:[%s369_s1] sm:$0x3] }
   0xd   : > { %s287_s13 = sshll.u32 %s375_s9, 1 }
   0xe   : > { %s175_s18 = scalar_lea.vmem %s368_s0, %s287_s13  ;;  %s186_s21 = scalar_lea.vmem %s370_s2, %s287_s13 }
   0xf   : > { %v187_v1 = vld [vmem:[%s175_s18] sm:$0x3] }
  0x10   : > { %v189_v2 = vadd.f32 %v188_v0, %v187_v1 }
  0x12   : > { %190 = vst [vmem:[%s186_s21] sm:$0x3] %v189_v2 }
  0x13 PF: > { %s12_s11 = sadd.s32 1, %s337_s11   ;;  %s371_s9 = smov %s333_s10 }
  0x14   : > { %p9_p5 = scmp.ge.s32.totalorder %s12_s11, 4   ;;  %s332_s10 = smov %s373_s12  }
  0x16   :  { %11 = sbr.rel (!%p9_p5) target bundleno = 2 (0x2), region = 61 }

</bundles_post_ra>
